<compile_context>
chip_gen: v5e
topology: v5e:2x2
jax: 0.10.0
libtpu: 0.0.40
codegen_flags: <defaults>
</compile_context>

<pallas_src>
import math
from functools import partial

import jax
import jax.numpy as jnp
from jax.experimental import pallas as pl
from jax.experimental.pallas import tpu as pltpu


def _scale_kernel(x_ref, o_ref, *, scale):
    # Single VPU elementwise multiply on the (tile_rows, lanes) VMEM tile.
    # Fully hidden under the HBM<->VMEM DMA (kernel is bandwidth bound).
    o_ref[...] = x_ref[...] * scale


def _per_buffer_budget_bytes() -> int:
    """Per-VMEM-buffer DMA-tile budget (4 live double-buffered buffers)."""
    try:
        kind = jax.devices()[0].device_kind.lower()
    except Exception:
        kind = ""
    if ("v6" in kind) or ("v7" in kind) or ("7x" in kind):
        # v6e / v7x: 4 x 6 MiB = 24 MiB, under the 32 MiB default scoped VMEM.
        return 6 * 1024 * 1024
    # v5e (and unknown chips): 4 x 3 MiB = 12 MiB, under the 16 MiB default.
    return 3 * 1024 * 1024


def _choose_layout(total: int, itemsize: int):
    """Pick a lane-dense (rows, lanes) layout, a sublane-aligned row tile and grid."""
    # Native sublane packing: 8 rows of 32-bit; sub-32-bit dtypes pack along
    # sublanes -> 16 rows (bf16/f16) or 32 rows (int8/fp8) per packed tile.
    sublane = 8 * max(1, 4 // itemsize)

    # Lane width: prefer a larger multiple of 128 when it divides the element
    # count exactly (keeps stores unmasked and avoids any padding).
    lanes = 128
    for cand in (1024, 512, 256):
        if total % cand == 0 and total // cand >= sublane:
            lanes = cand
            break

    rows = pl.cdiv(total, lanes)

    # Row tile: as big as the per-buffer byte budget allows, sublane-aligned.
    budget = _per_buffer_budget_bytes()
    max_tile_rows = max(sublane, (budget // (lanes * itemsize)) // sublane * sublane)

    if rows <= max_tile_rows:
        if rows >= 2 * sublane:
            # Give megacore (v7x: 2 TensorCores) at least two tiles to split.
            tile_rows = pl.cdiv(pl.cdiv(rows, 2), sublane) * sublane
        else:
            # Single tile equal to the full row extent (allowed even if not a
            # sublane multiple, since it equals the full array dim).
            tile_rows = rows
    else:
        tile_rows = max_tile_rows

    grid = pl.cdiv(rows, tile_rows)
    return lanes, rows, tile_rows, grid


def scale_pallas(x: jax.Array, scale=30, *, donate: bool = False) -> jax.Array:
    """Equivalent of torch: x * scale (elementwise, constant scalar)."""
    orig_shape = x.shape
    dtype = x.dtype
    itemsize = jnp.dtype(dtype).itemsize
    total = int(math.prod(orig_shape)) if orig_shape else 1

    if total == 0:
        return x

    # Keep PyTorch semantics for integer inputs: bake an integer constant so
    # the product stays in the input dtype instead of promoting to float.
    if jnp.issubdtype(dtype, jnp.floating):
        scale_const = float(scale)
    else:
        scale_const = int(scale)

    lanes, rows, tile_rows, grid = _choose_layout(total, itemsize)
    padded = rows * lanes

    # Metadata-only flatten; pad (< one lane-row) only when total % lanes != 0.
    flat = jnp.reshape(x, (total,))
    if padded != total:
        flat = jnp.pad(flat, (0, padded - total))
    x2d = jnp.reshape(flat, (rows, lanes))

    cost = pl.CostEstimate(
        flops=total, transcendentals=0, bytes_accessed=2 * total * itemsize
    )

    out2d = pl.pallas_call(
        partial(_scale_kernel, scale=scale_const),
        out_shape=jax.ShapeDtypeStruct((rows, lanes), dtype),
        grid_spec=pltpu.PrefetchScalarGridSpec(
            num_scalar_prefetch=0,
            grid=(grid,),
            in_specs=[pl.BlockSpec((tile_rows, lanes), lambda i: (i, 0))],
            out_specs=pl.BlockSpec((tile_rows, lanes), lambda i: (i, 0)),
        ),
        compiler_params=pltpu.CompilerParams(
            dimension_semantics=("parallel",),
        ),
        cost_estimate=cost,
        # In-place update halves peak HBM footprint when the caller donates x
        # at a jit boundary; off by default so eager callers keep x intact.
        input_output_aliases={0: 0} if donate else {},
    )(x2d)

    # Undo the (at most one-lane-row) padding and restore the original shape.
    out_flat = jnp.reshape(out2d, (padded,))
    if padded != total:
        out_flat = out_flat[:total]
    return jnp.reshape(out_flat, orig_shape)


if __name__ == "__main__":
    key = jax.random.PRNGKey(0)
    # Small NCHW input consistent with a typical conv feature map.
    x = jax.random.normal(key, (2, 4, 16, 16), dtype=jnp.float32)

    out = scale_pallas(x, scale=30)
    jax.block_until_ready(out)

    # Reference: plain JAX elementwise multiply (same semantics as torch x*30).
    ref = x * 30.0
    assert out.shape == x.shape, out.shape
    assert out.dtype == x.dtype
    assert bool(jnp.all(out == ref))

    print("KERNEL_OK")
</pallas_src>

<mosaic_0001>
module attributes {stable_mosaic.version = 11 : i64} {
  func.func @_scale_kernel(%arg0: i32, %arg1: memref<8x256xf32, #tpu.memory_space<vmem>>, %arg2: memref<8x256xf32, #tpu.memory_space<vmem>>) attributes {dimension_semantics = [#tpu.dimension_semantics<parallel>], iteration_bounds = array<i64: 1>, scalar_prefetch = 0 : i64, scratch_operands = 0 : i64, tpu.core_type = #tpu.core_type<tc>, window_params = [{transform_indices = @transform_0, window_bounds = array<i64: 8, 256>}, {transform_indices = @transform_1, window_bounds = array<i64: 8, 256>}]} {
    %c0 = arith.constant 0 : index
    %c0_0 = arith.constant 0 : index
    %0 = vector.load %arg1[%c0, %c0_0] : memref<8x256xf32, #tpu.memory_space<vmem>>, vector<8x256xf32>
    %cst = arith.constant 3.000000e+01 : f32
    %1 = vector.broadcast %cst : f32 to vector<8x256xf32>
    %2 = arith.mulf %0, %1 : vector<8x256xf32>
    %c0_1 = arith.constant 0 : index
    %c0_2 = arith.constant 0 : index
    %3 = vector.load %arg2[%c0_1, %c0_2] : memref<8x256xf32, #tpu.memory_space<vmem>>, vector<8x256xf32>
    tpu.vector_store %arg2[%c0_1, %c0_2], %2 {strides = array<i32>} : memref<8x256xf32, #tpu.memory_space<vmem>>, vector<8x256xf32>,
    return
  }
  func.func @transform_0(%arg0: i32) -> (i32, i32) {
    %c0_i32 = arith.constant 0 : i32
    %c0_i32_0 = arith.constant 0 : i32
    return %arg0, %c0_i32 : i32, i32
  }
  func.func @transform_1(%arg0: i32) -> (i32, i32) {
    %c0_i32 = arith.constant 0 : i32
    %c0_i32_0 = arith.constant 0 : i32
    return %arg0, %c0_i32 : i32, i32
  }
}

</mosaic_0001>

<bundles_post_ra>
// kernel: tpu_custom_call.1
= control target key start
LH: loop header
LB: loop body
LE: loop exit
PB: predicated region body
PF: predicated region fallthrough
CT: control target
= control target key end

     0   :  { %6 = vsyncpa [#allocation3], 0  ;;  %s118_s0 = inlined_call_operand.hbm [shape: f32[8,256], index: 0, kind: input, shape index: {}]   ;;  %s119_s1 = inlined_call_operand.hbm [shape: f32[8,256], index: 1, kind: output, shape index: {}]  }
   0x1   :  { %7 = vsyncpa [#allocation4], 0  ;;  %s13_s8 = sshll.u32 %s118_s0, 4  ;;  %s100_s9 = smov [#allocation2]   ;;  %s14_s8 = int_to_ptr.hbm [resolvable:$true] %s13_s8 }
   0x2   :  { %s15_s10 = sshll.u32 %s100_s9, 4  ;;  %s16_s10 = int_to_ptr.vmem [resolvable:$true] %s15_s10 }
   0x3   :  { %18 = dma.hbm_to_vmem [thread:$0]  %s14_s8, 256, %s16_s10, [#allocation3]  }
   0x4   :  { %96 = dma.done.wait [#allocation3], 256  }
   0x5   :  { %97 = vsyncadd [#allocation3], 4294967040  ;;  %s101_s11 = smov [#allocation5]   ;;  %s36_s15 = sshll.u32 %s119_s1, 4  ;;  %v23_v0 = vld [vmem:[#allocation2] sm:$0xff]  ;;  %v24_v1 = vld [vmem:[#allocation2 + $0x8] sm:$0xff]  ;;  %s37_s15 = int_to_ptr.hbm [resolvable:$true] %s36_s15 }
   0x6   :  { %s34_s12 = sshll.u32 %s101_s11, 4  ;;  %v25_v2 = vmul.f32 30.0, %v23_v0  ;;  %v26_v3 = vmul.f32 30.0, %v24_v1  ;;  %s35_s12 = int_to_ptr.vmem [resolvable:$true] %s34_s12 }
   0x8   :  { %27 = vst [vmem:[#allocation5] sm:$0xff] %v25_v2 }
   0x9   :  { %28 = vst [vmem:[#allocation5 + $0x8] sm:$0xff] %v26_v3 }
   0xa   :  { %39 = dma.vmem_to_hbm [thread:$0]  %s35_s12, 256, %s37_s15, [#allocation4]  }
   0xb   :  { %98 = dma.done.wait [#allocation4], 256  }
   0xc   :  { %99 = vsyncadd [#allocation4], 4294967040 }
   0xd   :  { %44 = vsyncpa [#allocation3], 1 }
   0xe   :  { %45 = vsyncpa [#allocation4], 1 }

</bundles_post_ra>
